<compile_context>
chip_gen: v6e
topology: v6e:2x2x1
jax: 0.10.0
libtpu: 0.0.40
codegen_flags: <defaults>
</compile_context>

<pallas_src>
import functools

import jax
import jax.numpy as jnp
from jax.experimental import pallas as pl
from jax.experimental.pallas import tpu as pltpu


# ----------------------------------------------------------------------------
# Fused kernel: conv3x3 + bias + ReLU + GAP + projection + fc head
# ----------------------------------------------------------------------------
def _basenet_kernel(x_ref, wb_ref, bt_ref, wp_ref, bp_ref, wh_ref, bh_ref,
                    *out_refs, hw_inv, with_fmap):
    # x_ref : (Nb, H+2, W*Cin)   bf16  H-padded image rows, lane-merged (col,ch)
    # wb_ref: (3, W*Cin, W*Cout) bf16  banded conv weight (W-pad folded in)
    # bt_ref: (1, W*Cout)        f32   conv bias tiled over W
    # wp_ref: (W*Cout, F)        bf16  projection weight with W-pool folded in
    # bp_ref: (1, F)             f32
    # wh_ref: (W*Cout, C)        bf16  fused head weight  (= wp_big @ w_fc)
    # bh_ref: (1, C)             f32   fused head bias    (= b_proj @ w_fc + b_fc)
    # outputs: [fmap (Nb, H, W*Cout) bf16], feat (Nb, 1, F) f32, logits (Nb, 1, C) f32
    if with_fmap:
        fmap_ref, feat_ref, logits_ref = out_refs
    else:
        fmap_ref = None
        feat_ref, logits_ref = out_refs

    nb, hp2, _ = x_ref.shape
    h = hp2 - 2
    bias = bt_ref[...]                                   # (1, W*Cout) f32

    # Per-image conv: 3 row-shifted dense matmuls against the resident banded
    # weight (one MXU push per kh).  Small static unroll over the batch block.
    pooled_rows = []
    for i in range(nb):
        acc = jnp.dot(x_ref[i, pl.ds(0, h), :], wb_ref[0],
                      preferred_element_type=jnp.float32)
        acc = acc + jnp.dot(x_ref[i, pl.ds(1, h), :], wb_ref[1],
                            preferred_element_type=jnp.float32)
        acc = acc + jnp.dot(x_ref[i, pl.ds(2, h), :], wb_ref[2],
                            preferred_element_type=jnp.float32)
        acc = jnp.maximum(acc + bias, 0.0)               # (H, W*Cout) f32
        if with_fmap:
            fmap_ref[i] = acc.astype(fmap_ref.dtype)     # lane-dense bf16 store
        # H-direction part of the global-average-pool (W-sum folded into wp/wh).
        pooled_rows.append(jnp.sum(acc, axis=0, keepdims=True) * hw_inv)

    pooled = jnp.concatenate(pooled_rows, axis=0)        # (Nb, W*Cout) f32
    pooled_bf = pooled.astype(jnp.bfloat16)

    # Batched head: feat and logits each a single (Nb,128)@(128,·) bf16 dot.
    feat = jnp.dot(pooled_bf, wp_ref[...],
                   preferred_element_type=jnp.float32) + bp_ref[...]
    logits = jnp.dot(pooled_bf, wh_ref[...],
                     preferred_element_type=jnp.float32) + bh_ref[...]
    feat_ref[...] = feat[:, None, :]
    logits_ref[...] = logits[:, None, :]


# ----------------------------------------------------------------------------
# One-time weight prep (hoisted out of the per-call path)
# ----------------------------------------------------------------------------
def prepare_basenet_params(params, *, W):
    """Precompute kernel-layout weights for spatial width W.  Call once."""
    w_conv = params["w_conv"]                            # (3, 3, Cin, Cout)
    Cin, Cout = w_conv.shape[2], w_conv.shape[3]
    w_proj = params["w_proj"].astype(jnp.float32)        # (Cout, F)
    b_proj = params["b_proj"].astype(jnp.float32)        # (1, F)
    w_fc = params["w_fc"].astype(jnp.float32)            # (F, C)
    b_fc = params["b_fc"].astype(jnp.float32)            # (1, C)

    # Banded conv weight with the W-direction zero pad folded in:
    #   wb[kh, p*Cin + c, j*Cout + o] = w_conv[kh, kw, c, o]  where p = j+kw-1,
    # out-of-range taps drop out (== zero padding).  K = W*Cin.
    onehot = jnp.stack([jnp.eye(W, W, k=kw - 1, dtype=w_conv.dtype)
                        for kw in range(3)])             # (3, W(out j), W(in p))
    wb = jnp.einsum("kwcd,wjp->kpcjd", w_conv, onehot)
    wb = wb.reshape(3, W * Cin, W * Cout).astype(jnp.bfloat16)

    b_tile = jnp.tile(params["b_conv"].reshape(1, Cout), (1, W)).astype(jnp.float32)
    wp_big = jnp.tile(w_proj, (W, 1))                    # (W*Cout, F), W-sum of GAP folded
    w_head = wp_big @ w_fc                               # (W*Cout, C) fused proj+fc
    b_head = b_proj @ w_fc + b_fc                        # (1, C)

    return {
        "wb": wb,
        "b_tile": b_tile,
        "wp_big": wp_big.astype(jnp.bfloat16),
        "b_proj": b_proj,
        "w_head": w_head.astype(jnp.bfloat16),
        "b_head": b_head,
    }


# ----------------------------------------------------------------------------
# Wrapper: BaseNet.forward
# ----------------------------------------------------------------------------
def base_net_forward(x_nchw, prep, *, images_per_step=None, return_fmaps=True,
                     fmaps_layout="nchw"):
    """x_nchw: (N, Cin, H, W) float32; prep: output of prepare_basenet_params."""
    N, Cin, H, W = x_nchw.shape
    WCout = prep["wb"].shape[2]
    Cout = WCout // W
    F = prep["wp_big"].shape[1]
    C = prep["w_head"].shape[1]
    assert prep["wb"].shape == (3, W * Cin, WCout), "prep was built for a different W/Cin"
    assert H % 8 == 0, "H must be 8-aligned (sublane tiling of the fmap store)"

    # Images per grid step: amortize per-step overhead, but keep >= 2 grid
    # blocks on the 'parallel' axis when possible so both v7x TCs get work.
    if images_per_step is None:
        images_per_step = max(1, min(8, -(-N // 2)))
    Nb = max(1, min(int(images_per_step), N))
    N_pad = -(-N // Nb) * Nb
    grid_n = N_pad // Nb

    # ---- input layout (traced once under jit): NCHW -> NHWC -> pad H only ----
    x_nhwc = jnp.transpose(x_nchw, (0, 2, 3, 1))
    x_pad = jnp.pad(x_nhwc, ((0, 0), (1, 1), (0, 0), (0, 0)))
    x_rows = x_pad.reshape(N, H + 2, W * Cin).astype(jnp.bfloat16)
    if N_pad != N:
        x_rows = jnp.pad(x_rows, ((0, N_pad - N), (0, 0), (0, 0)))

    kernel = functools.partial(_basenet_kernel, hw_inv=1.0 / float(H * W),
                               with_fmap=return_fmaps)

    in_specs = [
        pl.BlockSpec((Nb, H + 2, W * Cin), lambda n: (n, 0, 0)),
        pl.BlockSpec((3, W * Cin, WCout), lambda n: (0, 0, 0)),
        pl.BlockSpec((1, WCout), lambda n: (0, 0)),
        pl.BlockSpec((WCout, F), lambda n: (0, 0)),
        pl.BlockSpec((1, F), lambda n: (0, 0)),
        pl.BlockSpec((WCout, C), lambda n: (0, 0)),
        pl.BlockSpec((1, C), lambda n: (0, 0)),
    ]
    feat_spec = pl.BlockSpec((Nb, 1, F), lambda n: (n, 0, 0))
    logit_spec = pl.BlockSpec((Nb, 1, C), lambda n: (n, 0, 0))
    feat_shape = jax.ShapeDtypeStruct((N_pad, 1, F), jnp.float32)
    logit_shape = jax.ShapeDtypeStruct((N_pad, 1, C), jnp.float32)

    if return_fmaps:
        out_shape = (jax.ShapeDtypeStruct((N_pad, H, WCout), jnp.bfloat16),
                     feat_shape, logit_shape)
        out_specs = (pl.BlockSpec((Nb, H, WCout), lambda n: (n, 0, 0)),
                     feat_spec, logit_spec)
    else:
        out_shape = (feat_shape, logit_shape)
        out_specs = (feat_spec, logit_spec)

    outs = pl.pallas_call(
        kernel,
        out_shape=out_shape,
        grid_spec=pltpu.PrefetchScalarGridSpec(
            num_scalar_prefetch=0,
            grid=(grid_n,),
            in_specs=in_specs,
            out_specs=out_specs),
        compiler_params=pltpu.CompilerParams(
            dimension_semantics=("parallel",)),
    )(x_rows, prep["wb"], prep["b_tile"], prep["wp_big"],
      prep["b_proj"], prep["w_head"], prep["b_head"])

    if return_fmaps:
        fmap_flat, feat3, logits3 = outs
        fmap_flat = fmap_flat[:N]
        if fmaps_layout == "nchw":
            # Torch-contract layout (costs one extra HBM pass via XLA transpose).
            fmaps = [jnp.transpose(fmap_flat.reshape(N, H, W, Cout),
                                   (0, 3, 1, 2)).astype(jnp.float32)]
        else:
            # Lane-dense NHWC slab straight out of the kernel (no extra pass).
            fmaps = [fmap_flat.reshape(N, H, W, Cout)]
    else:
        feat3, logits3 = outs
        fmaps = []

    features = feat3[:N].reshape(N, F)
    logits = logits3[:N].reshape(N, C)

    # Same dict structure / update() semantics as BaseNet.forward.
    out = {"logits": logits}
    out.update({"fmaps": fmaps, "features": features})
    return out


# ----------------------------------------------------------------------------
# Params + pure-JAX reference (for correctness checking only)
# ----------------------------------------------------------------------------
def init_params(key, cin=4, cout=8, feat_dim=32, nb_classes=10):
    ks = jax.random.split(key, 6)
    s = 0.1
    return {
        "w_conv": s * jax.random.normal(ks[0], (3, 3, cin, cout), jnp.float32),
        "b_conv": s * jax.random.normal(ks[1], (1, cout), jnp.float32),
        "w_proj": s * jax.random.normal(ks[2], (cout, feat_dim), jnp.float32),
        "b_proj": s * jax.random.normal(ks[3], (1, feat_dim), jnp.float32),
        "w_fc": s * jax.random.normal(ks[4], (feat_dim, nb_classes), jnp.float32),
        "b_fc": s * jax.random.normal(ks[5], (1, nb_classes), jnp.float32),
    }


def reference_forward(x_nchw, params):
    w_conv = params["w_conv"].astype(jnp.bfloat16).astype(jnp.float32)
    x = jnp.transpose(x_nchw, (0, 2, 3, 1)).astype(jnp.bfloat16).astype(jnp.float32)
    xp = jnp.pad(x, ((0, 0), (1, 1), (1, 1), (0, 0)))
    N, Hp, Wp, Cin = xp.shape
    H, W = Hp - 2, Wp - 2
    Cout = w_conv.shape[-1]
    acc = jnp.zeros((N, H, W, Cout), jnp.float32)
    for kh in range(3):
        for kw in range(3):
            acc += jnp.einsum("nhwc,co->nhwo",
                              xp[:, kh:kh + H, kw:kw + W, :], w_conv[kh, kw])
    fmap = jnp.maximum(acc + params["b_conv"].reshape(1, 1, 1, Cout), 0.0)
    pooled = jnp.mean(fmap, axis=(1, 2))
    feat = pooled @ params["w_proj"] + params["b_proj"]
    logits = feat @ params["w_fc"] + params["b_fc"]
    return {"fmaps": [jnp.transpose(fmap, (0, 3, 1, 2))],
            "features": feat, "logits": logits}


if __name__ == "__main__":
    key = jax.random.PRNGKey(0)
    k_x, k_p, k_x2 = jax.random.split(key, 3)

    N, Cin, H, W = 2, 4, 16, 16
    x = jax.random.normal(k_x, (N, Cin, H, W), jnp.float32)
    params = init_params(k_p, cin=Cin, cout=8, feat_dim=32, nb_classes=10)

    # One-time weight prep (hoisted out of the per-call path).
    prep = prepare_basenet_params(params, W=W)

    fwd = jax.jit(base_net_forward,
                  static_argnames=("images_per_step", "return_fmaps", "fmaps_layout"))

    out = fwd(x, prep)
    jax.block_until_ready(out)

    # shape contract
    assert out["features"].shape == (N, 32)
    assert out["logits"].shape == (N, 10)
    assert out["fmaps"][0].shape == (N, 8, H, W)

    # numerical check against a pure-JAX reference (bf16 conv/head operands)
    ref = reference_forward(x, params)
    for a, b in ((out["features"], ref["features"]),
                 (out["logits"], ref["logits"]),
                 (out["fmaps"][0], ref["fmaps"][0])):
        assert jnp.allclose(a, b, rtol=2e-2, atol=2e-2), \
            float(jnp.max(jnp.abs(a - b)))

    # fmap-skipping fast path (dominant HBM write removed)
    out_nf = fwd(x, params and prep, return_fmaps=False)
    jax.block_until_ready(out_nf)
    assert jnp.allclose(out_nf["features"], out["features"], rtol=1e-5, atol=1e-5)
    assert jnp.allclose(out_nf["logits"], out["logits"], rtol=1e-5, atol=1e-5)

    # batched-images-per-step + batch-padding path (Nb=2, N=5 -> padded to 6)
    N2 = 5
    x2 = jax.random.normal(k_x2, (N2, Cin, H, W), jnp.float32)
    out2 = fwd(x2, prep, images_per_step=2)
    jax.block_until_ready(out2)
    ref2 = reference_forward(x2, params)
    assert jnp.allclose(out2["features"], ref2["features"], rtol=2e-2, atol=2e-2)
    assert jnp.allclose(out2["logits"], ref2["logits"], rtol=2e-2, atol=2e-2)
    assert jnp.allclose(out2["fmaps"][0], ref2["fmaps"][0], rtol=2e-2, atol=2e-2)

    print("KERNEL_OK")
</pallas_src>

<mosaic_0001>
module attributes {stable_mosaic.version = 11 : i64} {
  func.func @_basenet_kernel(%arg0: i32, %arg1: memref<1x18x64xbf16, #tpu.memory_space<vmem>>, %arg2: memref<3x64x128xbf16, #tpu.memory_space<vmem>>, %arg3: memref<1x128xf32, #tpu.memory_space<vmem>>, %arg4: memref<128x32xbf16, #tpu.memory_space<vmem>>, %arg5: memref<1x32xf32, #tpu.memory_space<vmem>>, %arg6: memref<128x10xbf16, #tpu.memory_space<vmem>>, %arg7: memref<1x10xf32, #tpu.memory_space<vmem>>, %arg8: memref<1x16x128xbf16, #tpu.memory_space<vmem>>, %arg9: memref<1x1x32xf32, #tpu.memory_space<vmem>>, %arg10: memref<1x1x10xf32, #tpu.memory_space<vmem>>) attributes {dimension_semantics = [#tpu.dimension_semantics<parallel>], iteration_bounds = array<i64: 2>, scalar_prefetch = 0 : i64, scratch_operands = 0 : i64, tpu.core_type = #tpu.core_type<tc>, window_params = [{transform_indices = @transform_0, window_bounds = array<i64: 1, 18, 64>}, {pipeline_mode = #tpu.pipeline_mode<synchronous>, transform_indices = @transform_1, window_bounds = array<i64: 3, 64, 128>}, {pipeline_mode = #tpu.pipeline_mode<synchronous>, transform_indices = @transform_2, window_bounds = array<i64: 1, 128>}, {pipeline_mode = #tpu.pipeline_mode<synchronous>, transform_indices = @transform_3, window_bounds = array<i64: 128, 32>}, {pipeline_mode = #tpu.pipeline_mode<synchronous>, transform_indices = @transform_4, window_bounds = array<i64: 1, 32>}, {pipeline_mode = #tpu.pipeline_mode<synchronous>, transform_indices = @transform_5, window_bounds = array<i64: 128, 10>}, {pipeline_mode = #tpu.pipeline_mode<synchronous>, transform_indices = @transform_6, window_bounds = array<i64: 1, 10>}, {transform_indices = @transform_7, window_bounds = array<i64: 1, 16, 128>}, {transform_indices = @transform_8, window_bounds = array<i64: 1, 1, 32>}, {transform_indices = @transform_9, window_bounds = array<i64: 1, 1, 10>}]} {
    %c0 = arith.constant 0 : index
    %c0_0 = arith.constant 0 : index
    %0 = vector.load %arg3[%c0, %c0_0] : memref<1x128xf32, #tpu.memory_space<vmem>>, vector<1x128xf32>
    %c0_1 = arith.constant 0 : index
    %c0_2 = arith.constant 0 : index
    %c0_3 = arith.constant 0 : index
    %1 = vector.load %arg1[%c0_1, %c0_2, %c0_3] : memref<1x18x64xbf16, #tpu.memory_space<vmem>>, vector<1x16x64xbf16>
    %2 = vector.shape_cast %1 : vector<1x16x64xbf16> to vector<16x64xbf16>
    %c0_4 = arith.constant 0 : index
    %c0_5 = arith.constant 0 : index
    %c0_6 = arith.constant 0 : index
    %3 = vector.load %arg2[%c0_4, %c0_5, %c0_6] : memref<3x64x128xbf16, #tpu.memory_space<vmem>>, vector<1x64x128xbf16>
    %4 = vector.shape_cast %3 : vector<1x64x128xbf16> to vector<64x128xbf16>
    %cst = arith.constant dense<0.000000e+00> : vector<16x128xf32>
    %5 = tpu.matmul %2, %4, %cst {dimension_numbers = #tpu.dot_dimension_numbers<[1], [0], [0], [1], [0, 0, 1, 1], [], []>} : vector<16x64xbf16>, vector<64x128xbf16>, vector<16x128xf32> -> vector<16x128xf32>
    %c0_7 = arith.constant 0 : index
    %c1 = arith.constant 1 : index
    %c0_8 = arith.constant 0 : index
    %6 = vector.load %arg1[%c0_7, %c1, %c0_8] : memref<1x18x64xbf16, #tpu.memory_space<vmem>>, vector<1x16x64xbf16>
    %7 = vector.shape_cast %6 : vector<1x16x64xbf16> to vector<16x64xbf16>
    %c1_9 = arith.constant 1 : index
    %c0_10 = arith.constant 0 : index
    %c0_11 = arith.constant 0 : index
    %8 = vector.load %arg2[%c1_9, %c0_10, %c0_11] : memref<3x64x128xbf16, #tpu.memory_space<vmem>>, vector<1x64x128xbf16>
    %9 = vector.shape_cast %8 : vector<1x64x128xbf16> to vector<64x128xbf16>
    %cst_12 = arith.constant dense<0.000000e+00> : vector<16x128xf32>
    %10 = tpu.matmul %7, %9, %cst_12 {dimension_numbers = #tpu.dot_dimension_numbers<[1], [0], [0], [1], [0, 0, 1, 1], [], []>} : vector<16x64xbf16>, vector<64x128xbf16>, vector<16x128xf32> -> vector<16x128xf32>
    %11 = arith.addf %5, %10 : vector<16x128xf32>
    %c0_13 = arith.constant 0 : index
    %c2 = arith.constant 2 : index
    %c0_14 = arith.constant 0 : index
    %12 = vector.load %arg1[%c0_13, %c2, %c0_14] : memref<1x18x64xbf16, #tpu.memory_space<vmem>>, vector<1x16x64xbf16>
    %13 = vector.shape_cast %12 : vector<1x16x64xbf16> to vector<16x64xbf16>
    %c2_15 = arith.constant 2 : index
    %c0_16 = arith.constant 0 : index
    %c0_17 = arith.constant 0 : index
    %14 = vector.load %arg2[%c2_15, %c0_16, %c0_17] : memref<3x64x128xbf16, #tpu.memory_space<vmem>>, vector<1x64x128xbf16>
    %15 = vector.shape_cast %14 : vector<1x64x128xbf16> to vector<64x128xbf16>
    %cst_18 = arith.constant dense<0.000000e+00> : vector<16x128xf32>
    %16 = tpu.matmul %13, %15, %cst_18 {dimension_numbers = #tpu.dot_dimension_numbers<[1], [0], [0], [1], [0, 0, 1, 1], [], []>} : vector<16x64xbf16>, vector<64x128xbf16>, vector<16x128xf32> -> vector<16x128xf32>
    %17 = arith.addf %11, %16 : vector<16x128xf32>
    %18 = vector.broadcast %0 : vector<1x128xf32> to vector<16x128xf32>
    %19 = arith.addf %17, %18 : vector<16x128xf32>
    %cst_19 = arith.constant 0.000000e+00 : f32
    %20 = vector.broadcast %cst_19 : f32 to vector<16x128xf32>
    %21 = arith.maximumf %19, %20 : vector<16x128xf32>
    %22 = arith.truncf %21 : vector<16x128xf32> to vector<16x128xbf16>
    %c0_20 = arith.constant 0 : index
    %c0_21 = arith.constant 0 : index
    %c0_22 = arith.constant 0 : index
    %23 = vector.load %arg8[%c0_20, %c0_21, %c0_22] : memref<1x16x128xbf16, #tpu.memory_space<vmem>>, vector<1x16x128xbf16>
    %24 = vector.shape_cast %23 : vector<1x16x128xbf16> to vector<16x128xbf16>
    %25 = vector.shape_cast %22 : vector<16x128xbf16> to vector<1x16x128xbf16>
    tpu.vector_store %arg8[%c0_20, %c0_21, %c0_22], %25 {strides = array<i32>} : memref<1x16x128xbf16, #tpu.memory_space<vmem>>, vector<1x16x128xbf16>,
    %cst_23 = arith.constant dense<0.000000e+00> : vector<128xf32>
    %26 = vector.multi_reduction <add>, %21, %cst_23 [0] : vector<16x128xf32> to vector<128xf32>
    %27 = vector.shape_cast %26 : vector<128xf32> to vector<1x128xf32>
    %cst_24 = arith.constant 3.906250e-03 : f32
    %28 = vector.broadcast %cst_24 : f32 to vector<1x128xf32>
    %29 = arith.mulf %27, %28 : vector<1x128xf32>
    %30 = arith.truncf %29 : vector<1x128xf32> to vector<1x128xbf16>
    %c0_25 = arith.constant 0 : index
    %c0_26 = arith.constant 0 : index
    %31 = vector.load %arg4[%c0_25, %c0_26] : memref<128x32xbf16, #tpu.memory_space<vmem>>, vector<128x32xbf16>
    %cst_27 = arith.constant dense<0.000000e+00> : vector<1x32xf32>
    %32 = tpu.matmul %30, %31, %cst_27 {dimension_numbers = #tpu.dot_dimension_numbers<[1], [0], [0], [1], [0, 0, 1, 1], [], []>} : vector<1x128xbf16>, vector<128x32xbf16>, vector<1x32xf32> -> vector<1x32xf32>
    %c0_28 = arith.constant 0 : index
    %c0_29 = arith.constant 0 : index
    %33 = vector.load %arg5[%c0_28, %c0_29] : memref<1x32xf32, #tpu.memory_space<vmem>>, vector<1x32xf32>
    %34 = arith.addf %32, %33 : vector<1x32xf32>
    %c0_30 = arith.constant 0 : index
    %c0_31 = arith.constant 0 : index
    %35 = vector.load %arg6[%c0_30, %c0_31] : memref<128x10xbf16, #tpu.memory_space<vmem>>, vector<128x10xbf16>
    %cst_32 = arith.constant dense<0.000000e+00> : vector<1x10xf32>
    %36 = tpu.matmul %30, %35, %cst_32 {dimension_numbers = #tpu.dot_dimension_numbers<[1], [0], [0], [1], [0, 0, 1, 1], [], []>} : vector<1x128xbf16>, vector<128x10xbf16>, vector<1x10xf32> -> vector<1x10xf32>
    %c0_33 = arith.constant 0 : index
    %c0_34 = arith.constant 0 : index
    %37 = vector.load %arg7[%c0_33, %c0_34] : memref<1x10xf32, #tpu.memory_space<vmem>>, vector<1x10xf32>
    %38 = arith.addf %36, %37 : vector<1x10xf32>
    %39 = vector.shape_cast %34 : vector<1x32xf32> to vector<1x1x32xf32>
    %c0_35 = arith.constant 0 : index
    %c0_36 = arith.constant 0 : index
    %c0_37 = arith.constant 0 : index
    %40 = vector.load %arg9[%c0_35, %c0_36, %c0_37] : memref<1x1x32xf32, #tpu.memory_space<vmem>>, vector<1x1x32xf32>
    tpu.vector_store %arg9[%c0_35, %c0_36, %c0_37], %39 {strides = array<i32>} : memref<1x1x32xf32, #tpu.memory_space<vmem>>, vector<1x1x32xf32>,
    %41 = vector.shape_cast %38 : vector<1x10xf32> to vector<1x1x10xf32>
    %c0_38 = arith.constant 0 : index
    %c0_39 = arith.constant 0 : index
    %c0_40 = arith.constant 0 : index
    %42 = vector.load %arg10[%c0_38, %c0_39, %c0_40] : memref<1x1x10xf32, #tpu.memory_space<vmem>>, vector<1x1x10xf32>
    tpu.vector_store %arg10[%c0_38, %c0_39, %c0_40], %41 {strides = array<i32>} : memref<1x1x10xf32, #tpu.memory_space<vmem>>, vector<1x1x10xf32>,
    return
  }
  func.func @transform_0(%arg0: i32) -> (i32, i32, i32) {
    %c0_i32 = arith.constant 0 : i32
    %c0_i32_0 = arith.constant 0 : i32
    %c0_i32_1 = arith.constant 0 : i32
    return %arg0, %c0_i32, %c0_i32_0 : i32, i32, i32
  }
  func.func @transform_1(%arg0: i32) -> (i32, i32, i32) {
    %c0_i32 = arith.constant 0 : i32
    %c0_i32_0 = arith.constant 0 : i32
    %c0_i32_1 = arith.constant 0 : i32
    %c0_i32_2 = arith.constant 0 : i32
    return %c0_i32, %c0_i32_0, %c0_i32_1 : i32, i32, i32
  }
  func.func @transform_2(%arg0: i32) -> (i32, i32) {
    %c0_i32 = arith.constant 0 : i32
    %c0_i32_0 = arith.constant 0 : i32
    %c0_i32_1 = arith.constant 0 : i32
    return %c0_i32, %c0_i32_0 : i32, i32
  }
  func.func @transform_3(%arg0: i32) -> (i32, i32) {
    %c0_i32 = arith.constant 0 : i32
    %c0_i32_0 = arith.constant 0 : i32
    %c0_i32_1 = arith.constant 0 : i32
    return %c0_i32, %c0_i32_0 : i32, i32
  }
  func.func @transform_4(%arg0: i32) -> (i32, i32) {
    %c0_i32 = arith.constant 0 : i32
    %c0_i32_0 = arith.constant 0 : i32
    %c0_i32_1 = arith.constant 0 : i32
    return %c0_i32, %c0_i32_0 : i32, i32
  }
  func.func @transform_5(%arg0: i32) -> (i32, i32) {
    %c0_i32 = arith.constant 0 : i32
    %c0_i32_0 = arith.constant 0 : i32
    %c0_i32_1 = arith.constant 0 : i32
    return %c0_i32, %c0_i32_0 : i32, i32
  }
  func.func @transform_6(%arg0: i32) -> (i32, i32) {
    %c0_i32 = arith.constant 0 : i32
    %c0_i32_0 = arith.constant 0 : i32
    %c0_i32_1 = arith.constant 0 : i32
    return %c0_i32, %c0_i32_0 : i32, i32
  }
  func.func @transform_7(%arg0: i32) -> (i32, i32, i32) {
    %c0_i32 = arith.constant 0 : i32
    %c0_i32_0 = arith.constant 0 : i32
    %c0_i32_1 = arith.constant 0 : i32
    return %arg0, %c0_i32, %c0_i32_0 : i32, i32, i32
  }
  func.func @transform_8(%arg0: i32) -> (i32, i32, i32) {
    %c0_i32 = arith.constant 0 : i32
    %c0_i32_0 = arith.constant 0 : i32
    %c0_i32_1 = arith.constant 0 : i32
    return %arg0, %c0_i32, %c0_i32_0 : i32, i32, i32
  }
  func.func @transform_9(%arg0: i32) -> (i32, i32, i32) {
    %c0_i32 = arith.constant 0 : i32
    %c0_i32_0 = arith.constant 0 : i32
    %c0_i32_1 = arith.constant 0 : i32
    return %arg0, %c0_i32, %c0_i32_0 : i32, i32, i32
  }
}

</mosaic_0001>

<bundles_post_ra>
// kernel: base_net_forward.1
= control target key start
LH: loop header
LB: loop body
LE: loop exit
PB: predicated region body
PF: predicated region fallthrough
CT: control target
= control target key end

     0   :  { %s1685_s0 = inlined_call_operand.vmem [shape: bf16[2,18,64], index: 0, kind: input, shape index: {}]   ;;  %s1686_s1 = inlined_call_operand.vmem [shape: bf16[3,64,128], index: 1, kind: input, shape index: {}]   ;;  %s1687_s2 = inlined_call_operand.vmem [shape: f32[1,128], index: 2, kind: input, shape index: {}]   ;;  %s1688_s3 = inlined_call_operand.vmem [shape: bf16[128,32], index: 3, kind: input, shape index: {}]   ;;  %s1689_s4 = inlined_call_operand.vmem [shape: f32[1,32], index: 4, kind: input, shape index: {}]   ;;  %s1690_s5 = inlined_call_operand.vmem [shape: bf16[128,10], index: 5, kind: input, shape index: {}]   ;;  %s1691_s6 = inlined_call_operand.vmem [shape: f32[1,10], index: 6, kind: input, shape index: {}]   ;;  %s1692_s7 = inlined_call_operand.vmem [shape: bf16[2,16,128], index: 7, kind: output, shape index: {0}]   ;;  %s1693_s8 = inlined_call_operand.hbm [shape: f32[2,1,32], index: 8, kind: output, shape index: {1}]   ;;  %s1694_s9 = inlined_call_operand.hbm [shape: f32[2,1,10], index: 9, kind: output, shape index: {2}]  }
   0x1   :  { %1695 = sst [smem:[#allocation8_spill]] %s1685_s0 }
   0x2   :  { %1696 = sst [smem:[#allocation9_spill]] %s1686_s1 }
   0x3   :  { %15 = vsyncpa [#allocation3], 0 }
   0x4   :  { %17 = vsyncpa [#allocation3 + $0x1], 0 }
   0x5   :  { %18 = vsyncpa [#allocation5], 0 }
   0x6   :  { %20 = vsyncpa [#allocation5 + $0x1], 0  ;;  %s1412_s30 = smov 0   ;;  %s1414_s10 = smov 0  }
   0x7   :  { %s1416_s11 = smov 0   ;;  %s1418_s12 = smov 0  }
   0x8 LB: > { %s1433_s13 = sadd.s32 4294967295, %s1356_s12   ;;  %s1007_s14 = sadd.s32 4294967294, %s1356_s12   ;;  %s1356_s12 = sphi %s1418_s12, %s1704_s12   ;;  %s1352_s11 = sphi %s1416_s11, %s1703_s11   ;;  %s1348_s10 = sphi %s1414_s10, %s1702_s10   ;;  %s1344_s30 = sphi %s1412_s30, %s1701_s30  }
   0x9   : > { %s1437_s15 = sadd.s32 1, %s1356_s12   ;;  %s211_s16 = sadd.s32 1, %s1352_s11 }
   0xa   : > { %s208_s17 = ssub.s32 %s1356_s12, %s1437_s15  ;;  %p221_p0 = scmp.ne.s32.totalorder %s1352_s11, %s1348_s10 }
   0xb   : > { %p209_p1 = scmp.eq.s32.totalorder %s208_s17, 0  ;;  %p222_p2 = scmp.eq.s32.totalorder %s1433_s13, 1 }
   0xc   : > { %p227_p3 = scmp.ne.s32.totalorder %s1348_s10, %s1344_s30  ;;  %p228_p4 = scmp.eq.s32.totalorder %s1007_s14, 1 }
   0xd   : > { %s1448_s18 = scalar_select %p209_p1, %s1352_s11, %s211_s16  }
   0xe   : > { %p1450_p5 = por %p222_p2, %p221_p0  ;;  %p1454_p6 = por %p228_p4, %p227_p3 }
   0xf   : > { %p1010_p7 = scmp.ge.s32.totalorder %s1356_s12, 1  ;;  %p298_p8 = scmp.lt.s32.totalorder %s1356_s12, 3 }
  0x11   : > { %p299_p9 = pnand %p1010_p7, %p298_p8 }
  0x12   : > { %s1699_s1 = sld [smem:[#allocation9_spill]] (!%p299_p9)  ;;  %p342_p10 = scmp.lt.s32.totalorder (!%p299_p9), %s1433_s13, 1 }
  0x13   : > { %302 = sbr.rel (%p299_p9) target bundleno = 509 (0x1fd), region = 48  ;;  %s1700_s0 = sld [smem:[#allocation8_spill]] (!%p299_p9) }
  0x14   : > { %s1067_s21 = sshll.u32 (!%p299_p9), %s1433_s13, 4 }
  0x15   : > { %s1622_s24 = scalar_lea.hbm (!%p299_p9), %s1694_s9, %s1067_s21 }
  0x18   : > { %v1235_v0 = vld [vmem:[%s1699_s1 + $0x38] sm:$0xff]   ;;  %v1358_v1 = vmov 0.0   ;;  %v1237_v3 = vld [vmem:[%s1699_s1 + $0x30] sm:$0xff]   ;;  %vm1359_vm0 = vmmov 0   ;;  %s1482_s29 = scalar_select %p342_p10, %s1433_s13, 1  ;;  %v1239_v5 = vld [vmem:[%s1699_s1 + $0x28] sm:$0xff]  }
  0x19   : > { %1112 = vmatprep.subr.bf16.mxu0 %v1358_v1  ;;  %1124 = vmatprep.subr.bf16.mxu1 %v1358_v1  ;;  %v1236_v2 = vld [vmem:[%s1699_s1 + $0x18] sm:$0xff]   ;;  %v1238_v4 = vld [vmem:[%s1699_s1 + $0x10] sm:$0xff]   ;;  %v1240_v6 = vld [vmem:[%s1699_s1 + $0x8] sm:$0xff]   ;;  %vm382_vm1 = vsmask.f32 7424  ;;  %vm419_vm2 = vcmask 523264   ;;  %s1615_s13 = scalar_lea.hbm %s1693_s8, %s1067_s21 }
  0x1a   : > { %1113 = vmatpush3.bf16.msra.mxu0 %v1235_v0  ;;  %1120 = vmatprep.mubr.msk.bf16.mxu0 %vm1359_vm0, %v1358_v1  ;;  %s1188_s17 = smul.u32 12, %s1482_s29  ;;  %v1241_v9 = vld [vmem:[%s1699_s1 + $0x20] sm:$0xff]   ;;  %v1245_v18 = vld [vmem:[%s1699_s1 + $0x58] sm:$0xff]   ;;  %v1246_v21 = vld [vmem:[%s1699_s1 + $0x50] sm:$0xff]   ;;  %vm544_vm3 = vcmask 1046528   ;;  %s1071_s28 = sshll.u32 %s1482_s29, 3 }
  0x1b   : > { %1125 = vmatpush3.bf16.msra.mxu1 %v1236_v2  ;;  %1114 = vmatprep.subr.bf16.mxu0 %v1358_v1  ;;  %v1242_v12 = vld [vmem:[%s1699_s1] sm:$0xff]   ;;  %v1247_v23 = vld [vmem:[%s1699_s1 + $0x48] sm:$0xff]   ;;  %v1250_v29 = vld [vmem:[%s1688_s3 + $0x38] sm:$0xff]   ;;  %s1601_s29 = sand.u32 1, %s1348_s10   ;;  %vm857_vm4 = vcmask 253952   ;;  %vm859_vm5 = vcmask 73728  }
  0x1c   : > { %1126 = vmatprep.subr.bf16.mxu1 %v1358_v1  ;;  %1132 = vmatprep.mubr.msk.bf16.mxu1 %vm1359_vm0, %v1358_v1  ;;  %s346_s25 = scalar_lea.vmem %s1700_s0, %s1188_s17  ;;  %v1248_v25 = vld [vmem:[%s1699_s1 + $0x40] sm:$0xff]   ;;  %v1251_v30 = vld [vmem:[%s1690_s5 + $0x38] sm:$0xff]   ;;  %v1252_v31 = vld [vmem:[%s1688_s3 + $0x30] sm:$0xff]   ;;  %s351_s17 = scalar_lea.vmem %s1692_s7, %s1071_s28 }
  0x1d   : > { %v354_v7 = vld [vmem:[%s346_s25] sm:$0xf]  ;;  %v355_v8 = vld [vmem:[%s346_s25 + $0x4] sm:$0xf]  ;;  %v1253_v32 = vld [vmem:[%s1690_s5 + $0x30] sm:$0xff]   ;;  %s341_s28 = scalar_lea.vmem [#allocation4], %s1601_s29 }
  0x1e   : > { %1115 = vmatpush3.bf16.msra.mxu0 %v1237_v3  ;;  %v1022_v10 = vcombine.low %v354_v7, %v355_v8  ;;  %v1244_v11 = vld [vmem:[%s346_s25 + $0x8] ss:$0 sps:$4 sm:$0x11]   ;;  %v531_v22 = vld [vmem:[%s346_s25] sm:$0xe]  ;;  %v1258_v37 = vld [vmem:[%s1688_s3 + $0x18] sm:$0xff]  }
  0x1f   : > { %1127 = vmatpush3.bf16.msra.mxu1 %v1238_v4  ;;  %1116 = vmatprep.subr.bf16.mxu0 %v1358_v1  ;;  %v391_v15 = vshll.u32 %v1244_v11, 16  ;;  %v1042_v24 = vcombine.low %v531_v22, %v355_v8  ;;  %v546_v27 = vrot.slane %v1244_v11, 1  ;;  %v1254_v33 = vld [vmem:[%s1688_s3 + $0x28] sm:$0xff]   ;;  %v1256_v35 = vld [vmem:[%s1688_s3 + $0x20] sm:$0xff]   ;;  %v1259_v38 = vld [vmem:[%s1690_s5 + $0x18] sm:$0xff]   ;;  %s335_s25 = scalar_lea.vmem [#allocation2], %s1601_s29 }
  0x20   : > { %1128 = vmatprep.subr.bf16.mxu1 %v1358_v1  ;;  %v384_v13 = vshrl.u32 %v1022_v10, 16  ;;  %v386_v14 = vshll.u32 %v1022_v10, 16  ;;  %v1255_v34 = vld [vmem:[%s1690_s5 + $0x28] sm:$0xff]   ;;  %v1257_v36 = vld [vmem:[%s1690_s5 + $0x20] sm:$0xff]   ;;  %v1260_v39 = vld [vmem:[%s1688_s3 + $0x10] sm:$0xff]   ;;  %s886_s27 = sshll.u32 %s335_s25, 4  ;;  %s1617_s27 = int_to_ptr.vmem [resolvable:$true] %s886_s27 }
  0x21   : > { %v393_v17 = vrot.slane %v391_v15, 1  ;;  %v545_v26 = vrot.slane %v1042_v24, 1  ;;  %v1261_v40 = vld [vmem:[%s1690_s5 + $0x10] sm:$0xff]   ;;  %v1262_v41 = vld [vmem:[%s1688_s3 + $0x8] sm:$0xff]   ;;  %v1264_v43 = vld [vmem:[%s1688_s3] sm:$0xff]   ;;  %s899_s14 = sshll.u32 %s341_s28, 4  ;;  %s1624_s14 = int_to_ptr.vmem [resolvable:$true] %s899_s14 }
  0x22   : > { %1117 = vmatpush3.bf16.msra.mxu0 %v1239_v5  ;;  %v388_v16 = vrot.slane %v386_v14, 1  ;;  %v1263_v42 = vld [vmem:[%s1690_s5 + $0x8] sm:$0xff]   ;;  %v1265_v44 = vld [vmem:[%s1690_s5] sm:$0xff]   ;;  %s867_s26 = scalar_lea.sflag [#allocation3], %s1601_s29  ;;  %s1266_s16 = scalar_lea.vmem %s1617_s27, 16 }
  0x23   : > { %1129 = vmatpush3.bf16.msra.mxu1 %v1240_v6  ;;  %1118 = vmatprep.subr.bf16.mxu0 %v1358_v1  ;;  %v547_v28 = vsel %vm544_vm3, %v545_v26, %v546_v27  ;;  %v1048_v56 = vld [vmem:[%s1687_s2] ss:$0 sm:$0xff]  ;;  %p1267_p11 = scmp.ne.s32.totalorder %s1617_s27, %s1266_s16 }
  0x24   : > { %1130 = vmatprep.subr.bf16.mxu1 %v1358_v1  ;;  %v389_v19 = vor.u32 %v388_v16, %v384_v13  ;;  %v768_v13 = vld [vmem:[%s1691_s6] sm:$0x1] }
  0x25   : > { %p1268_p12 = pnand %p1267_p11, %p1450_p5 }
  0x26   : > { %1119 = vmatpush3.bf16.msra.mxu0 %v1241_v9  ;;  %v394_v20 = vsel %vm382_vm1, %v389_v19, %v393_v17 }
  0x27   : > { %1131 = vmatpush3.bf16.msra.mxu1 %v1242_v12  ;;  %1136 = vmatprep.subr.bf16.mxu0 %v1358_v1  ;;  %v663_v12 = vld [vmem:[%s1689_s4] sm:$0x1]  ;;  %p1269_p13 = pneg %p1268_p12 }
  0x28   : > { %1148 = vmatprep.subr.bf16.mxu1 %v1358_v1 }
  0x29   : > { %1121 = vmatmul.mubr.msk.bf16.vlgmr.msra.gmra.mxu0 %vm419_vm2, %v394_v20 }
  0x2a   : > { %1133 = vmatmul.mubr.msk.bf16.vlgmr.msra.gmra.mxu1 %vm419_vm2, %v1022_v10  ;;  %1137 = vmatpush3.bf16.msra.mxu0 %v1245_v18 }
  0x2b   : > { %1164 = vmatprep.mubr.msk.bf16.mxu1 %vm1359_vm0, %v1358_v1  ;;  %1144 = vmatprep.mubr.msk.bf16.mxu0 %vm1359_vm0, %v1358_v1 }
  0x2c   : > { %1138 = vmatprep.subr.bf16.mxu0 %v1358_v1  ;;  %1149 = vmatpush3.bf16.msra.mxu1 %v1250_v29 }
  0x2d   : > { %1150 = vmatprep.subr.bf16.mxu1 %v1358_v1 }
  0x2e   : > { %1139 = vmatpush3.bf16.msra.mxu0 %v1246_v21 }
  0x2f   : > { %1140 = vmatprep.subr.bf16.mxu0 %v1358_v1 }
  0x30   : > { %1151 = vmatpush3.bf16.msra.mxu1 %v1252_v31 }
  0x31   : > { %1152 = vmatprep.subr.bf16.mxu1 %v1358_v1 }
  0x32   : > { %1141 = vmatpush3.bf16.msra.mxu0 %v1247_v23 }
  0x33   : > { %1142 = vmatprep.subr.bf16.mxu0 %v1358_v1 }
  0x34   : > { %1153 = vmatpush3.bf16.msra.mxu1 %v1254_v33 }
  0x35   : > { %1154 = vmatprep.subr.bf16.mxu1 %v1358_v1 }
  0x36   : > { %1143 = vmatpush3.bf16.msra.mxu0 %v1248_v25 }
  0x37   : > { %1168 = vmatprep.subr.bf16.mxu0 %v1358_v1 }
  0x38   : > { %1155 = vmatpush3.bf16.msra.mxu1 %v1256_v35 }
  0x39   : > { %1145 = vmatmul.mubr.msk.bf16.vlgmr.msra.gmra.mxu0 %vm419_vm2, %v547_v28  ;;  %1156 = vmatprep.subr.bf16.mxu1 %v1358_v1 }
  0x3a   : > { %1184 = vmatprep.mubr.msk.bf16.mxu0 %vm1359_vm0, %v1358_v1  ;;  %1169 = vmatpush3.bf16.msra.mxu0 %v1251_v30 }
  0x3b   : > { %1170 = vmatprep.subr.bf16.mxu0 %v1358_v1 }
  0x3c   : > { %1157 = vmatpush3.bf16.msra.mxu1 %v1258_v37 }
  0x3d   : > { %1158 = vmatprep.subr.bf16.mxu1 %v1358_v1 }
  0x3e   : > { %1171 = vmatpush3.bf16.msra.mxu0 %v1253_v32 }
  0x3f   : > { %1172 = vmatprep.subr.bf16.mxu0 %v1358_v1 }
  0x40   : > { %1159 = vmatpush3.bf16.msra.mxu1 %v1260_v39 }
  0x41   : > { %1160 = vmatprep.subr.bf16.mxu1 %v1358_v1 }
  0x42   : > { %1173 = vmatpush3.bf16.msra.mxu0 %v1255_v34 }
  0x43   : > { %1174 = vmatprep.subr.bf16.mxu0 %v1358_v1 }
  0x44   : > { %1161 = vmatpush3.bf16.msra.mxu1 %v1262_v41 }
  0x45   : > { %1162 = vmatprep.subr.bf16.mxu1 %v1358_v1 }
  0x46   : > { %1175 = vmatpush3.bf16.msra.mxu0 %v1257_v36 }
  0x47   : > { %1176 = vmatprep.subr.bf16.mxu0 %v1358_v1 }
  0x48   : > { %1163 = vmatpush3.bf16.msra.mxu1 %v1264_v43 }
  0x4a   : > { %1177 = vmatpush3.bf16.msra.mxu0 %v1259_v38 }
  0x4b   : > { %1178 = vmatprep.subr.bf16.mxu0 %v1358_v1 }
  0x4e   : > { %1179 = vmatpush3.bf16.msra.mxu0 %v1261_v40 }
  0x4f   : > { %1180 = vmatprep.subr.bf16.mxu0 %v1358_v1 }
  0x52   : > { %1181 = vmatpush3.bf16.msra.mxu0 %v1263_v42 }
  0x53   : > { %1182 = vmatprep.subr.bf16.mxu0 %v1358_v1 }
  0x56   : > { %1183 = vmatpush3.bf16.msra.mxu0 %v1265_v44 }
  0xe9   : > { %v457_v46 = vpop.f32.mrf.mxu0 }
  0xea   : > { %v524_v45 = vpop.f32.mrf.mxu1 }
  0xeb   : > { %v1122_v48 = vpop.f32.mrf.mxu0  ;;  %v525_v53 = vadd.f32 %v524_v45, %v457_v46 }
  0xec   : > { %v1134_v47 = vpop.f32.mrf.mxu1 }
  0xed   : > { %v460_v50 = vpop.f32.mrf.mxu0 }
  0xee   : > { %v527_v49 = vpop.f32.mrf.mxu1 }
  0xef   : > { %v1123_v52 = vpop.f32.mrf.mxu0  ;;  %v528_v58 = vadd.f32 %v527_v49, %v460_v50 }
  0xf0   : > { %v1135_v51 = vpop.f32.mrf.mxu1 }
  0xf9   : > { %v609_v54 = vpop.f32.mrf.mxu0 }
  0xfa   : > { %v616_v55 = vadd.f32 %v609_v54, %v525_v53 }
  0xfb   : > { %v1146_v57 = vpop.f32.mrf.mxu0 }
  0xfc   : > { %v624_v60 = vadd.f32 %v1048_v56, %v616_v55 }
  0xfd   : > { %v612_v59 = vpop.f32.mrf.mxu0 }
  0xfe   : > { %v617_v61 = vadd.f32 %v612_v59, %v528_v58  ;;  %v626_v0 = vmax.f32 %v624_v60, 0.0 }
  0xff   : > { %v1147_v62 = vpop.f32.mrf.mxu0 }
 0x100   : > { %v625_v63 = vadd.f32 %v1048_v56, %v617_v61 }
 0x102   : > { %v627_v1 = vmax.f32 %v625_v63, 0.0 }
 0x104   : > { %v1077_v2 = vpack.c.bf16 %v627_v1, %v626_v0  ;;  %v638_v3 = vadd.f32 %v627_v1, %v626_v0 }
 0x106   : > { %1078 = vst [vmem:[%s351_s17] sm:$0xff] %v1077_v2   ;;  %v639_v4 = vrot.slane %v638_v3, 4  ;;  %s1360_s17 = smov [#allocation2]  }
 0x107   : > { %s1270_s0 = sshll.u32 %s1360_s17, 4  ;;  %s1271_s0 = int_to_ptr.vmem [resolvable:$false] %s1270_s0 }
 0x108   : > { %v640_v5 = vadd.f32 %v639_v4, %v638_v3  ;;  %s1272_s1 = scalar_lea.vmem %s1271_s0, 32  ;;  %p1273_p0 = scmp.lt.s32.totalorder %s1617_s27, %s1271_s0 }
 0x109   : > { %p1274_p1 = scmp.lt.s32.totalorder %s1272_s1, %s1266_s16 }
 0x10a   : > { %v641_v6 = vrot.slane %v640_v5, 2 }
 0x10b   : > { %p1275_p2 = por %p1274_p1, %p1273_p0 }
 0x10c   : > { %v642_v7 = vadd.f32 %v641_v6, %v640_v5 }
 0x10d   : > { %p1276_p3 = pnand %p1275_p2, %p1269_p13 }
 0x10e   : > { %v643_v8 = vrot.slane %v642_v7, 1 }
 0x110   : > { %v644_v9 = vadd.f32 %v643_v8, %v642_v7 }
 0x112   : > { %v645_v10 = vmul.f32 0.00390625, %v644_v9 }
 0x114   : > { %v646_v11 = vpack.c.bf16 %v645_v10, %v645_v10 }
 0x116   : > { %1165 = vmatmul.mubr.bf16.vlgmr.msra.gmra.mxu1 %v646_v11  ;;  %1185 = vmatmul.mubr.bf16.vlgmr.msra.gmra.mxu0 %v646_v11 }
 0x1d6   : > { %v746_v14 = vpop.f32.mrf.mxu1  ;;  %v851_v15 = vpop.f32.mrf.mxu0 }
 0x1d7   : > { %v747_v16 = vadd.f32 %v746_v14, %v663_v12  ;;  %v852_v17 = vadd.f32 %v851_v15, %v768_v13 }
 0x1d8   : > { %v1166_v18 = vpop.f32.mrf.mxu1  ;;  %v1186_v19 = vpop.f32.mrf.mxu0 }
 0x1d9   : > { %858 = vst.msk [vmem:[%s335_s25] sm:$0x1] %vm857_vm4, %v747_v16 }
 0x1da   : > { %860 = vst.msk [vmem:[%s341_s28] sm:$0x1] %vm859_vm5, %v852_v17  ;;  %v749_v20 = vpop.f32.mrf.mxu1  ;;  %v854_v21 = vpop.f32.mrf.mxu0 }
 0x1db   : > { %1279 = shalt.err (!%p1276_p3)
}
 0x1dc   : > { %s1280_s21 = scalar_lea.hbm %s1615_s13, 16  ;;  %s1284_s22 = scalar_lea.hbm %s1693_s8, 32 }
 0x1dd   : > { %p1281_p4 = scmp.ne.s32.totalorder %s1615_s13, %s1280_s21  ;;  %p1285_p9 = scmp.lt.s32.totalorder %s1615_s13, %s1693_s8 }
 0x1de   : > { %p1286_p10 = scmp.lt.s32.totalorder %s1284_s22, %s1280_s21 }
 0x1df   : > { %p1282_p7 = pnand %p1281_p4, %p1450_p5 }
 0x1e0   : > { %p1287_p11 = por %p1286_p10, %p1285_p9 }
 0x1e1   : > { %p1283_p8 = pneg %p1282_p7 }
 0x1e3   : > { %p1288_p12 = pnand %p1287_p11, %p1283_p8 }
 0x1e5   : > { %1291 = shalt.err (!%p1288_p12)
}
 0x1e6   : > { %1189 = dma.vmem_to_hbm [thread:$0]  (%p1450_p5), %s1617_s27, 16, %s1615_s13, %s867_s26  }
 0x1e7   : > { %s871_s0 = scalar_lea.sflag [#allocation5], %s1601_s29  ;;  %s1292_s1 = scalar_lea.vmem %s1624_s14, 16 }
 0x1e8   : > { %p1293_p13 = scmp.ne.s32.totalorder %s1624_s14, %s1292_s1  ;;  %s1361_s16 = smov [#allocation4]  }
 0x1e9   : > { %s1296_s21 = sshll.u32 %s1361_s16, 4  ;;  %s1297_s21 = int_to_ptr.vmem [resolvable:$false] %s1296_s21 }
 0x1ea   : > { %p1294_p0 = pnand %p1293_p13, %p1450_p5  ;;  %s1298_s25 = scalar_lea.vmem %s1297_s21, 32 }
 0x1eb   : > { %p1299_p2 = scmp.lt.s32.totalorder %s1624_s14, %s1297_s21  ;;  %p1300_p3 = scmp.lt.s32.totalorder %s1298_s25, %s1292_s1 }
 0x1ec   : > { %p1295_p1 = pneg %p1294_p0 }
 0x1ed   : > { %p1301_p4 = por %p1300_p3, %p1299_p2 }
 0x1ef   : > { %p1302_p7 = pnand %p1301_p4, %p1295_p1 }
 0x1f1   : > { %1305 = shalt.err (!%p1302_p7)
}
 0x1f2   : > { %s1306_s27 = scalar_lea.hbm %s1622_s24, 16  ;;  %s1310_s26 = scalar_lea.hbm %s1694_s9, 32 }
 0x1f3   : > { %p1307_p8 = scmp.ne.s32.totalorder %s1622_s24, %s1306_s27  ;;  %p1311_p11 = scmp.lt.s32.totalorder %s1622_s24, %s1694_s9 }
 0x1f4   : > { %p1312_p12 = scmp.lt.s32.totalorder %s1310_s26, %s1306_s27 }
 0x1f5   : > { %p1308_p9 = pnand %p1307_p8, %p1450_p5 }
 0x1f6   : > { %p1313_p13 = por %p1312_p12, %p1311_p11 }
 0x1f7   : > { %p1309_p10 = pneg %p1308_p9 }
 0x1f9   : > { %p1314_p0 = pnand %p1313_p13, %p1309_p10 }
 0x1fb   : > { %1317 = shalt.err (!%p1314_p0)
}
 0x1fc   : > { %1190 = dma.vmem_to_hbm [thread:$0]  (%p1450_p5), %s1624_s14, 16, %s1622_s24, %s871_s0   ;;  %v1167_v22 = vpop.f32.mrf.mxu1  ;;  %v1187_v23 = vpop.f32.mrf.mxu0 }
 0x1fd PF: > { %p1200_p1 = scmp.ge.s32.totalorder %s1356_s12, 2  ;;  %s919_s23 = sand.u32 1, %s1344_s30  }
 0x1fe   : > { %s920_s17 = scalar_lea.sflag [#allocation3], %s919_s23 }
 0x1ff   : > { %p1194_p2 = pnand %p1200_p1, %p1454_p6 }
 0x201   : > { %p1195_p3 = pneg %p1194_p2 }
 0x203   : > { %1335 = dma.done.wait (%p1195_p3), %s920_s17, 16  }
 0x204   : > { %1337 = vsyncadd (%p1195_p3), %s920_s17, 4294967280  ;;  %s928_s1 = scalar_lea.sflag [#allocation5], %s919_s23 }
 0x205   : > { %1339 = dma.done.wait (%p1195_p3), %s928_s1, 16  }
 0x206   : > { %1341 = vsyncadd (%p1195_p3), %s928_s1, 4294967280  ;;  %p23_p5 = scmp.ge.s32.totalorder %s1437_s15, 4   ;;  %s1701_s30 = smov %s1348_s10 }
 0x207   : > { %s1702_s10 = smov %s1352_s11  ;;  %s1703_s11 = smov %s1448_s18 }
 0x208   : > { %s1704_s12 = smov %s1437_s15  ;;  %25 = sbr.rel (!%p23_p5) target bundleno = 8 (0x8), region = 114 }
 0x20d   :  { %932 = vsyncpa [#allocation3], 1 }
 0x20e   :  { %934 = vsyncpa [#allocation3 + $0x1], 1 }
 0x20f   :  { %935 = vsyncpa [#allocation5], 1 }
 0x210   :  { %937 = vsyncpa [#allocation5 + $0x1], 1 }

</bundles_post_ra>
